<compile_context>
chip_gen: v5e
topology: v5e:2x2
jax: 0.10.0
libtpu: 0.0.40
codegen_flags: <defaults>
</compile_context>

<pallas_src>
import functools

import jax
import jax.numpy as jnp
from jax.experimental import pallas as pl
from jax.experimental.pallas import tpu as pltpu

IN_FEATURES = 136
N1 = 64
N2 = 64
OUT_FEATURES = 1

# 2048-row tiles: x tile (lane-padded 136 -> 256 f32 lanes) is 2 MiB per buffer,
# 4 MiB double-buffered -- tiny vs. every generation's VMEM, and big enough that
# the ~0.35us per-grid-step overhead is a small fraction of the tile DMA time.
DEFAULT_BLOCK_B = 2048


def _round_up(n, m):
    return ((n + m - 1) // m) * m


def _pick_block_b(B):
    """Choose a batch tile: one tile for small batches, else large tiles but
    with >= 4 grid steps so the 'parallel' axis can shard across 2 TCs (v7x)."""
    if B <= DEFAULT_BLOCK_B:
        return _round_up(max(B, 1), 8)
    tile = DEFAULT_BLOCK_B
    while tile > 256 and pl.cdiv(B, tile) < 4:
        tile //= 2
    return tile


def _mlp_kernel(x_ref, w1_ref, b1_ref, w2_ref, b2_ref, w3_ref, b3_ref, o_ref):
    """Fused 3-layer MLP on one (block_b, 136) x-tile.

    Layers 1-2 run on the MXU with f32 accumulation; the final (N=1) layer is a
    transposed contraction so the result lands lane-dense as (1, block_b).
    Bias-add / ReLU run on the VPU, sigmoid's exp on the EUP.
    """
    cd = w1_ref.dtype                                                  # compute dtype (f32 or bf16)
    x = x_ref[...].astype(cd)                                          # (TB, 136)

    h = jnp.dot(x, w1_ref[...], preferred_element_type=jnp.float32)   # (TB, 64) f32 acc
    h = jnp.maximum(h + b1_ref[...], 0.0)                             # bias + ReLU (f32)

    h = jnp.dot(h.astype(w2_ref.dtype), w2_ref[...],
                preferred_element_type=jnp.float32)                   # (TB, 64)
    h = jnp.maximum(h + b2_ref[...], 0.0)

    # Last layer: (1, 64) contracted against (TB, 64) on the feature axis
    # -> (1, TB): batch ends up on the lane axis (lane-dense, unmasked stores).
    # TODO(synk): on v5e-f32 this transposed form may cost an XLU transpose of h
    # that competes with vmatmul pushes; bf16 compute restores the MXU slack.
    z = jax.lax.dot_general(
        w3_ref[...], h.astype(w3_ref.dtype),
        dimension_numbers=(((1,), (1,)), ((), ())),
        preferred_element_type=jnp.float32,
    )                                                                  # (1, TB)
    z = z + b3_ref[0]                                                  # scalar bias from SMEM
    o_ref[...] = jax.nn.sigmoid(z)


@functools.partial(jax.jit, static_argnames=("block_b", "compute_dtype"))
def nn_forward(x, params, *, block_b=None, compute_dtype=jnp.float32):
    """Run the fused MLP.

    x: (B, 136) f32 (or bf16).  params: dict of w1,b1,w2,b2,w3,b3.
    compute_dtype=jnp.bfloat16 casts matmul inputs to bf16 (f32 accumulation);
    this is a perf option, not bit-faithful to the f32 PyTorch path.
    """
    B, F = x.shape
    assert F == IN_FEATURES, f"expected {IN_FEATURES} input features, got {F}"

    if block_b is None:
        block_b = _pick_block_b(B)
    assert block_b % 8 == 0, "block_b must be a multiple of 8 (sublane constraint)"

    num_blocks = pl.cdiv(B, block_b)
    assert num_blocks == 1 or block_b % 128 == 0, (
        "block_b must be a multiple of 128 (lane constraint of the lane-dense "
        "output) when the batch spans multiple tiles")

    out_cols = num_blocks * block_b  # padded output columns; tail sliced off below

    # Weights cast once (tiny, VMEM-resident); biases stay f32 (post-accumulation add).
    w1 = params["w1"].astype(compute_dtype)               # (136, 64)
    w2 = params["w2"].astype(compute_dtype)               # (64, 64)
    w3_row = jnp.transpose(params["w3"]).astype(compute_dtype)  # (1, 64) row layout
    b1 = params["b1"].astype(jnp.float32)                 # (1, 64)
    b2 = params["b2"].astype(jnp.float32)                 # (1, 64)
    b3_smem = jnp.reshape(params["b3"], (1,)).astype(jnp.float32)

    # Advisory cost hint for XLA's scheduler around this custom call.
    param_bytes = 4 * (IN_FEATURES * N1 + N1 + N1 * N2 + N2 + N2 * OUT_FEATURES + OUT_FEATURES)
    cost = pl.CostEstimate(
        flops=2 * B * (IN_FEATURES * N1 + N1 * N2 + N2 * OUT_FEATURES),
        transcendentals=B,
        bytes_accessed=B * IN_FEATURES * x.dtype.itemsize + B * OUT_FEATURES * 4 + param_bytes,
    )

    out_row = pl.pallas_call(
        _mlp_kernel,
        out_shape=jax.ShapeDtypeStruct((1, out_cols), jnp.float32),
        grid_spec=pltpu.PrefetchScalarGridSpec(
            num_scalar_prefetch=0,
            grid=(num_blocks,),
            in_specs=[
                # x tile, pipelined over the batch; the last tile may extend past
                # B rows -> masked boundary DMA (no jnp.pad copy of x needed).
                pl.BlockSpec((block_b, IN_FEATURES), lambda i: (i, 0)),
                pl.BlockSpec((IN_FEATURES, N1), lambda i: (0, 0)),        # w1 (VMEM-resident)
                pl.BlockSpec((1, N1), lambda i: (0, 0)),                  # b1
                pl.BlockSpec((N1, N2), lambda i: (0, 0)),                 # w2
                pl.BlockSpec((1, N2), lambda i: (0, 0)),                  # b2
                pl.BlockSpec((OUT_FEATURES, N2), lambda i: (0, 0)),       # w3 row
                pl.BlockSpec(memory_space=pltpu.MemorySpace.SMEM),        # b3 scalar
            ],
            out_specs=pl.BlockSpec((1, block_b), lambda i: (0, i)),       # lane-dense out
        ),
        compiler_params=pltpu.CompilerParams(
            dimension_semantics=("parallel",),   # batch tiles are independent (megacore on v7x)
            vmem_limit_bytes=32 * 1024 * 1024,   # headroom for large tiles on v5e's 16 MiB default
        ),
        cost_estimate=cost,
    )(x, w1, b1, w2, b2, w3_row, b3_smem)

    # (1, out_cols) with batch on lanes -> (B, 1); padded tail columns dropped.
    return out_row.reshape(-1)[:B].reshape(B, OUT_FEATURES)


def init_params(key):
    """Deterministic init mirroring torch.nn.Linear default U(-1/sqrt(fan_in), +...).

    Weights are stored as (in, out) so the kernel/reference compute x @ W + b,
    numerically identical to PyTorch's x @ W_torch.T + b.
    """
    k = jax.random.split(key, 6)

    def lin(kw, kb, fan_in, fan_out):
        bound = 1.0 / jnp.sqrt(jnp.float32(fan_in))
        w = jax.random.uniform(kw, (fan_in, fan_out), jnp.float32, -bound, bound)
        b = jax.random.uniform(kb, (1, fan_out), jnp.float32, -bound, bound)
        return w, b

    w1, b1 = lin(k[0], k[1], IN_FEATURES, N1)
    w2, b2 = lin(k[2], k[3], N1, N2)
    w3, b3 = lin(k[4], k[5], N2, OUT_FEATURES)
    return {"w1": w1, "b1": b1, "w2": w2, "b2": b2, "w3": w3, "b3": b3}


def _reference(x, p):
    h = jnp.maximum(x @ p["w1"] + p["b1"], 0.0)
    h = jnp.maximum(h @ p["w2"] + p["b2"], 0.0)
    return jax.nn.sigmoid(h @ p["w3"] + p["b3"])


if __name__ == "__main__":
    key = jax.random.PRNGKey(0)
    kx, kp = jax.random.split(key)
    params = init_params(kp)

    # 1) Small single-tile case (grid=(1,), block covers the whole batch).
    B = 8
    x = jax.random.normal(kx, (B, IN_FEATURES), dtype=jnp.float32)
    out = jax.block_until_ready(nn_forward(x, params))
    ref = _reference(x, params)
    assert out.shape == (B, OUT_FEATURES)
    assert jnp.allclose(out, ref, atol=1e-5, rtol=1e-5), "mismatch vs JAX reference (B=8)"

    # 2) Ragged multi-tile case with an explicit small tile: exercises the
    #    pipelined grid, the masked tail tile (no jnp.pad copy of x) and the
    #    lane-dense output reassembly / slicing.
    B2 = 300
    x2 = jax.random.normal(jax.random.PRNGKey(1), (B2, IN_FEATURES), dtype=jnp.float32)
    out2 = jax.block_until_ready(nn_forward(x2, params, block_b=128))
    ref2 = _reference(x2, params)
    assert out2.shape == (B2, OUT_FEATURES)
    assert jnp.allclose(out2, ref2, atol=1e-5, rtol=1e-5), "mismatch vs JAX reference (B=300)"

    # 3) Larger ragged batch with the default tile picker (masked tail again).
    B3 = 2500
    x3 = jax.random.normal(jax.random.PRNGKey(2), (B3, IN_FEATURES), dtype=jnp.float32)
    out3 = jax.block_until_ready(nn_forward(x3, params))
    ref3 = _reference(x3, params)
    assert out3.shape == (B3, OUT_FEATURES)
    assert jnp.allclose(out3, ref3, atol=1e-5, rtol=1e-5), "mismatch vs JAX reference (B=2500)"

    # 4) Optional bf16 MXU path (perf knob, not bit-faithful) -- loose tolerance.
    out4 = jax.block_until_ready(nn_forward(x3, params, compute_dtype=jnp.bfloat16))
    assert jnp.allclose(out4, ref3, atol=5e-2, rtol=5e-2), "bf16 path too far from f32 reference"

    print("KERNEL_OK")
</pallas_src>

<mosaic_0001>
module attributes {stable_mosaic.version = 11 : i64} {
  func.func @_mlp_kernel(%arg0: i32, %arg1: memref<8x136xf32, #tpu.memory_space<vmem>>, %arg2: memref<136x64xf32, #tpu.memory_space<vmem>>, %arg3: memref<1x64xf32, #tpu.memory_space<vmem>>, %arg4: memref<64x64xf32, #tpu.memory_space<vmem>>, %arg5: memref<1x64xf32, #tpu.memory_space<vmem>>, %arg6: memref<1x64xf32, #tpu.memory_space<vmem>>, %arg7: memref<1xf32, #tpu.memory_space<smem>>, %arg8: memref<1x8xf32, #tpu.memory_space<vmem>>) attributes {dimension_semantics = [#tpu.dimension_semantics<parallel>], iteration_bounds = array<i64: 1>, scalar_prefetch = 0 : i64, scratch_operands = 0 : i64, tpu.core_type = #tpu.core_type<tc>, window_params = [{transform_indices = @transform_0, window_bounds = array<i64: 8, 136>}, {pipeline_mode = #tpu.pipeline_mode<synchronous>, transform_indices = @transform_1, window_bounds = array<i64: 136, 64>}, {pipeline_mode = #tpu.pipeline_mode<synchronous>, transform_indices = @transform_2, window_bounds = array<i64: 1, 64>}, {pipeline_mode = #tpu.pipeline_mode<synchronous>, transform_indices = @transform_3, window_bounds = array<i64: 64, 64>}, {pipeline_mode = #tpu.pipeline_mode<synchronous>, transform_indices = @transform_4, window_bounds = array<i64: 1, 64>}, {pipeline_mode = #tpu.pipeline_mode<synchronous>, transform_indices = @transform_5, window_bounds = array<i64: 1, 64>}, {transform_indices = @transform_6, window_bounds = array<i64: 1>}, {transform_indices = @transform_7, window_bounds = array<i64: 1, 8>}]} {
    %c0 = arith.constant 0 : index
    %c0_0 = arith.constant 0 : index
    %0 = vector.load %arg1[%c0, %c0_0] : memref<8x136xf32, #tpu.memory_space<vmem>>, vector<8x136xf32>
    %c0_1 = arith.constant 0 : index
    %c0_2 = arith.constant 0 : index
    %1 = vector.load %arg2[%c0_1, %c0_2] : memref<136x64xf32, #tpu.memory_space<vmem>>, vector<136x64xf32>
    %cst = arith.constant dense<0.000000e+00> : vector<8x64xf32>
    %2 = tpu.matmul %0, %1, %cst {dimension_numbers = #tpu.dot_dimension_numbers<[1], [0], [0], [1], [0, 0, 1, 1], [], []>} : vector<8x136xf32>, vector<136x64xf32>, vector<8x64xf32> -> vector<8x64xf32>
    %c0_3 = arith.constant 0 : index
    %c0_4 = arith.constant 0 : index
    %3 = vector.load %arg3[%c0_3, %c0_4] : memref<1x64xf32, #tpu.memory_space<vmem>>, vector<1x64xf32>
    %4 = vector.broadcast %3 : vector<1x64xf32> to vector<8x64xf32>
    %5 = arith.addf %2, %4 : vector<8x64xf32>
    %cst_5 = arith.constant 0.000000e+00 : f32
    %6 = vector.broadcast %cst_5 : f32 to vector<8x64xf32>
    %7 = arith.maximumf %5, %6 : vector<8x64xf32>
    %c0_6 = arith.constant 0 : index
    %c0_7 = arith.constant 0 : index
    %8 = vector.load %arg4[%c0_6, %c0_7] : memref<64x64xf32, #tpu.memory_space<vmem>>, vector<64x64xf32>
    %cst_8 = arith.constant dense<0.000000e+00> : vector<8x64xf32>
    %9 = tpu.matmul %7, %8, %cst_8 {dimension_numbers = #tpu.dot_dimension_numbers<[1], [0], [0], [1], [0, 0, 1, 1], [], []>} : vector<8x64xf32>, vector<64x64xf32>, vector<8x64xf32> -> vector<8x64xf32>
    %c0_9 = arith.constant 0 : index
    %c0_10 = arith.constant 0 : index
    %10 = vector.load %arg5[%c0_9, %c0_10] : memref<1x64xf32, #tpu.memory_space<vmem>>, vector<1x64xf32>
    %11 = vector.broadcast %10 : vector<1x64xf32> to vector<8x64xf32>
    %12 = arith.addf %9, %11 : vector<8x64xf32>
    %cst_11 = arith.constant 0.000000e+00 : f32
    %13 = vector.broadcast %cst_11 : f32 to vector<8x64xf32>
    %14 = arith.maximumf %12, %13 : vector<8x64xf32>
    %c0_12 = arith.constant 0 : index
    %c0_13 = arith.constant 0 : index
    %15 = vector.load %arg6[%c0_12, %c0_13] : memref<1x64xf32, #tpu.memory_space<vmem>>, vector<1x64xf32>
    %cst_14 = arith.constant dense<0.000000e+00> : vector<1x8xf32>
    %16 = tpu.matmul %15, %14, %cst_14 {dimension_numbers = #tpu.dot_dimension_numbers<[1], [1], [0], [0], [0, 0, 1, 0], [], []>} : vector<1x64xf32>, vector<8x64xf32>, vector<1x8xf32> -> vector<1x8xf32>
    %c0_15 = arith.constant 0 : index
    %17 = memref.load %arg7[%c0_15] : memref<1xf32, #tpu.memory_space<smem>>
    %18 = vector.broadcast %17 : f32 to vector<1x8xf32>
    %19 = arith.addf %16, %18 : vector<1x8xf32>
    %20 = arith.negf %19 : vector<1x8xf32>
    %21 = math.exp %20 : vector<1x8xf32>
    %cst_16 = arith.constant 1.000000e+00 : f32
    %22 = vector.broadcast %cst_16 : f32 to vector<1x8xf32>
    %23 = arith.addf %22, %21 : vector<1x8xf32>
    %24 = arith.divf %22, %23 : vector<1x8xf32>
    %c0_17 = arith.constant 0 : index
    %c0_18 = arith.constant 0 : index
    %25 = vector.load %arg8[%c0_17, %c0_18] : memref<1x8xf32, #tpu.memory_space<vmem>>, vector<1x8xf32>
    tpu.vector_store %arg8[%c0_17, %c0_18], %24 {strides = array<i32>} : memref<1x8xf32, #tpu.memory_space<vmem>>, vector<1x8xf32>,
    return
  }
  func.func @transform_0(%arg0: i32) -> (i32, i32) {
    %c0_i32 = arith.constant 0 : i32
    %c0_i32_0 = arith.constant 0 : i32
    return %arg0, %c0_i32 : i32, i32
  }
  func.func @transform_1(%arg0: i32) -> (i32, i32) {
    %c0_i32 = arith.constant 0 : i32
    %c0_i32_0 = arith.constant 0 : i32
    %c0_i32_1 = arith.constant 0 : i32
    return %c0_i32, %c0_i32_0 : i32, i32
  }
  func.func @transform_2(%arg0: i32) -> (i32, i32) {
    %c0_i32 = arith.constant 0 : i32
    %c0_i32_0 = arith.constant 0 : i32
    %c0_i32_1 = arith.constant 0 : i32
    return %c0_i32, %c0_i32_0 : i32, i32
  }
  func.func @transform_3(%arg0: i32) -> (i32, i32) {
    %c0_i32 = arith.constant 0 : i32
    %c0_i32_0 = arith.constant 0 : i32
    %c0_i32_1 = arith.constant 0 : i32
    return %c0_i32, %c0_i32_0 : i32, i32
  }
  func.func @transform_4(%arg0: i32) -> (i32, i32) {
    %c0_i32 = arith.constant 0 : i32
    %c0_i32_0 = arith.constant 0 : i32
    %c0_i32_1 = arith.constant 0 : i32
    return %c0_i32, %c0_i32_0 : i32, i32
  }
  func.func @transform_5(%arg0: i32) -> (i32, i32) {
    %c0_i32 = arith.constant 0 : i32
    %c0_i32_0 = arith.constant 0 : i32
    %c0_i32_1 = arith.constant 0 : i32
    return %c0_i32, %c0_i32_0 : i32, i32
  }
  func.func @transform_6(%arg0: i32) -> i32 {
    %c0_i32 = arith.constant 0 : i32
    %c0_i32_0 = arith.constant 0 : i32
    return %c0_i32 : i32
  }
  func.func @transform_7(%arg0: i32) -> (i32, i32) {
    %c0_i32 = arith.constant 0 : i32
    %c0_i32_0 = arith.constant 0 : i32
    return %c0_i32, %arg0 : i32, i32
  }
}

</mosaic_0001>

<bundles_post_ra>
// kernel: nn_forward.1
= control target key start
LH: loop header
LB: loop body
LE: loop exit
PB: predicated region body
PF: predicated region fallthrough
CT: control target
= control target key end

     0   :  { %vm51_vm0 = vcmask 64512   ;;  %s374_s0 = inlined_call_operand.vmem [shape: f32[8,136], index: 0, kind: input, shape index: {}]   ;;  %s375_s1 = inlined_call_operand.vmem [shape: f32[136,64], index: 1, kind: input, shape index: {}]   ;;  %s376_s2 = inlined_call_operand.vmem [shape: f32[1,64], index: 2, kind: input, shape index: {}]   ;;  %s377_s3 = inlined_call_operand.vmem [shape: f32[64,64], index: 3, kind: input, shape index: {}]   ;;  %s378_s4 = inlined_call_operand.vmem [shape: f32[1,64], index: 4, kind: input, shape index: {}]   ;;  %s379_s5 = inlined_call_operand.vmem [shape: f32[1,64], index: 5, kind: input, shape index: {}]   ;;  %s380_s6 = inlined_call_operand.<no memory space> [shape: f32[1], index: 6, kind: input, shape index: {}]   ;;  %s381_s7 = inlined_call_operand.hbm [shape: f32[1,8], index: 7, kind: output, shape index: {}]  }
   0x1   :  { %v45_v0 = vld [vmem:[%s375_s1 + $0x78] sm:$0xff]  ;;  %v44_v1 = vld [vmem:[%s375_s1 + $0x70] sm:$0xff]  ;;  %v43_v2 = vld [vmem:[%s375_s1 + $0x68] sm:$0xff] }
   0x2   :  { %55 = vmatpush.msra.mxu0 %v45_v0  ;;  %v42_v3 = vld [vmem:[%s375_s1 + $0x60] sm:$0xff]  ;;  %v41_v5 = vld [vmem:[%s375_s1 + $0x58] sm:$0xff]  ;;  %v29_v6 = vld [vmem:[%s374_s0 + $0x8] sm:$0xff] }
   0x3   :  { %v46_v4 = vld [vmem:[%s375_s1 + $0x80] sm:$0xff]  ;;  %v103_v7 = vld [vmem:[%s377_s3 + $0x38] sm:$0xff]  ;;  %v102_v8 = vld [vmem:[%s377_s3 + $0x30] sm:$0xff] }
   0x4   :  { %56 = vmatpush.msra.mxu0 %v44_v1  ;;  %90 = vmatpush.msra.mxu1 %v46_v4  ;;  %v40_v9 = vld [vmem:[%s375_s1 + $0x50] sm:$0xff] }
   0x5   :  { %199 = vmatmul.msk.f32.vlgmr.msra.gmra.mxu1 %vm51_vm0, %v29_v6  ;;  %120 = vmatpush.msra.mxu2 %v103_v7 }
   0x6   :  { %57 = vmatpush.msra.mxu0 %v43_v2 }
   0x8   :  { %58 = vmatpush.msra.mxu0 %v42_v3 }
   0x9   :  { %13 = vsyncpa [#allocation4], 0  ;;  %v101_v10 = vld [vmem:[%s377_s3 + $0x28] sm:$0xff]  ;;  %121 = vmatpush.msra.mxu2 %v102_v8  ;;  %v100_v12 = vld [vmem:[%s377_s3 + $0x20] sm:$0xff]  ;;  %vm108_vm1 = vcmask 523264   ;;  %v135_v38 = vstv %s380_s6  ;;  %s190_s6 = sshll.u32 %s381_s7, 4  ;;  %s191_s6 = int_to_ptr.hbm [resolvable:$true] %s190_s6 }
   0xa   :  { %59 = vmatpush.msra.mxu0 %v41_v5  ;;  %v39_v11 = vld [vmem:[%s375_s1 + $0x48] sm:$0xff]  ;;  %v38_v13 = vld [vmem:[%s375_s1 + $0x40] sm:$0xff]  ;;  %v37_v14 = vld [vmem:[%s375_s1 + $0x38] sm:$0xff]  ;;  %vm181_vm5 = vcmask 57344  }
   0xb   :  { %122 = vmatpush.msra.mxu2 %v101_v10  ;;  %v36_v15 = vld [vmem:[%s375_s1 + $0x30] sm:$0xff]  ;;  %v35_v16 = vld [vmem:[%s375_s1 + $0x28] sm:$0xff]  ;;  %v34_v17 = vld [vmem:[%s375_s1 + $0x20] sm:$0xff] }
   0xc   :  { %60 = vmatpush.msra.mxu0 %v40_v9  ;;  %v33_v18 = vld [vmem:[%s375_s1 + $0x18] sm:$0xff]  ;;  %v32_v19 = vld [vmem:[%s375_s1 + $0x10] sm:$0xff]  ;;  %v31_v20 = vld [vmem:[%s375_s1 + $0x8] sm:$0xff] }
   0xd   :  { %123 = vmatpush.msra.mxu2 %v100_v12  ;;  %v30_v21 = vld [vmem:[%s375_s1] sm:$0xff]  ;;  %v99_v23 = vld [vmem:[%s377_s3 + $0x18] sm:$0xff]  ;;  %v98_v24 = vld [vmem:[%s377_s3 + $0x10] sm:$0xff] }
   0xe   :  { %61 = vmatpush.msra.mxu0 %v39_v11  ;;  %v28_v22 = vld [vmem:[%s374_s0] sm:$0xff]  ;;  %v97_v25 = vld [vmem:[%s377_s3 + $0x8] sm:$0xff] }
   0xf   :  { %124 = vmatpush.msra.mxu2 %v99_v23  ;;  %v96_v26 = vld [vmem:[%s377_s3] sm:$0xff] }
  0x10   :  { %62 = vmatpush.msra.mxu0 %v38_v13  ;;  %v205_v27 = vld [vmem:[%s376_s2] ss:$0 sm:$0xff] }
  0x11   :  { %125 = vmatpush.msra.mxu2 %v98_v24  ;;  %v206_v33 = vld [vmem:[%s378_s4] ss:$0 sm:$0xff]  ;;  %s237_s4 = smov [#allocation3]  }
  0x12   :  { %63 = vmatpush.msra.mxu0 %v37_v14  ;;  %v133_v37 = vld [vmem:[%s379_s5] sm:$0x1]  ;;  %s188_s5 = sshll.u32 %s237_s4, 4  ;;  %s189_s5 = int_to_ptr.vmem [resolvable:$true] %s188_s5 }
  0x13   :  { %126 = vmatpush.msra.mxu2 %v97_v25 }
  0x14   :  { %64 = vmatpush.msra.mxu0 %v36_v15 }
  0x15   :  { %127 = vmatpush.msra.mxu2 %v96_v26 }
  0x16   :  { %65 = vmatpush.msra.mxu0 %v35_v16 }
  0x18   :  { %66 = vmatpush.msra.mxu0 %v34_v17 }
  0x1a   :  { %67 = vmatpush.msra.mxu0 %v33_v18 }
  0x1c   :  { %68 = vmatpush.msra.mxu0 %v32_v19 }
  0x1e   :  { %69 = vmatpush.msra.mxu0 %v31_v20 }
  0x20   :  { %70 = vmatpush.msra.mxu0 %v30_v21 }
  0x21   :  { %71 = vmatmul.f32.vlgmr.msra.gmra.mxu0 %v28_v22 }
  0x82   :  { %v92_v29 = vpop.f32.mrf.mxu1 }
  0x9e   :  { %v72_v28 = vpop.f32.mrf.mxu0 }
  0x9f   :  { %v73_v30 = vadd.f32 %v205_v27, %v72_v28 }
  0xa1   :  { %v93_v31 = vadd.f32 %v92_v29, %v73_v30 }
  0xa3   :  { %v95_v32 = vmax.f32 %v93_v31, 0.0 }
  0xa5   :  { %200 = vmatmul.msk.f32.vlgmr.msra.gmra.mxu2 %vm108_vm1, %v95_v32 }
 0x128   :  { %v129_v34 = vpop.f32.mrf.mxu2 }
 0x129   :  { %v130_v35 = vadd.f32 %v206_v33, %v129_v34 }
 0x12b   :  { %v132_v36 = vmax.f32 %v130_v35, 0.0 }
 0x12d   :  { %201 = vmatpush.xpose.msk.msra.mxu3 %vm108_vm1, %v132_v36 }
 0x130   :  { %202 = vmatmul.msk.f32.vlgmr.msra.gmra.mxu3 %vm108_vm1, %v133_v37 }
 0x1b3   :  { %v159_v39 = vpop.f32.mrf.mxu3 }
 0x1b4   :  { %v160_v40 = vadd.f32 %v159_v39, %v135_v38 }
 0x1b6   :  { %v203_v41 = vmul.f32 -1.442695, %v160_v40 }
 0x1b8   :  { %207 = vpow2.f32 %v203_v41 }
 0x1be   :  { %v208_v42 = vpop.eup %207 }
 0x1bf   :  { %v165_v43 = vadd.f32 1.0, %v208_v42 }
 0x1c1   :  { %209 = vrcp.f32 %v165_v43  ;;  %v177_v47 = vand.u32 2147483648, %v165_v43  ;;  %v175_v49 = vand.u32 2147483647, %v165_v43  ;;  %vm171_vm3 = vweird.f32 %v165_v43 }
 0x1c3   :  { %v178_v51 = vor.u32 1.1754944e-38, %v177_v47  ;;  %vm176_vm6 = vcmp.eq.f32.partialorder %v175_v49, 8.507059e+37 }
 0x1c7   :  { %v210_v44 = vpop.eup %209 }
 0x1c8   :  { %v167_v45 = vmul.f32 %v210_v44, %v165_v43  ;;  %vm172_vm2 = vweird.f32 %v210_v44 }
 0x1c9   :  { %vm173_vm4 = vmor %vm171_vm3, %vm172_vm2 }
 0x1ca   :  { %v168_v46 = vsub.f32 1.0, %v167_v45 }
 0x1cc   :  { %v169_v48 = vmul.f32 %v210_v44, %v168_v46 }
 0x1ce   :  { %v170_v50 = vadd.f32 %v210_v44, %v169_v48 }
 0x1d0   :  { %v174_v52 = vsel %vm173_vm4, %v210_v44, %v170_v50 }
 0x1d1   :  { %v179_v53 = vsel %vm176_vm6, %v178_v51, %v174_v52 }
 0x1d2   :  { %182 = vst.msk [vmem:[#allocation3] sm:$0x1] %vm181_vm5, %v179_v53 }
 0x1d3   :  { %193 = dma.vmem_to_hbm [thread:$0]  %s189_s5, 16, %s191_s6, [#allocation4]  }
 0x1d4   :  { %235 = dma.done.wait [#allocation4], 16  }
 0x1d5   :  { %236 = vsyncadd [#allocation4], 4294967280 }
 0x1d6   :  { %198 = vsyncpa [#allocation4], 1 }

</bundles_post_ra>
